<compile_context>
chip_gen: v7x
topology: tpu7x:2x2x1
jax: 0.10.0
libtpu: 0.0.40
codegen_flags: <defaults>
</compile_context>

<pallas_src>
import functools

import jax
import jax.numpy as jnp
from jax.experimental import pallas as pl
from jax.experimental.pallas import tpu as pltpu


# ----------------------------------------------------------------------------- kernels
def attention_gate_slab_kernel(p2_ref, w1_ref, b1_ref, x_ref, o_ref, *, c1, c2):
    """One (batch, spatial-block) grid step for tiny channel counts.

    p2_ref : SMEM (4,)             folded conv2+BN taps: [max, mean/C1, bias, pad]
    w1_ref : SMEM (C2*C1,)         folded conv1 weight (read as scalar splats)
    b1_ref : SMEM (C2,)            folded conv1 bias
    x_ref  : VMEM (1, C1, SB, 128) spatial on sublane x lane, channels as slabs
    o_ref  : VMEM (1, C2, SB, 128) output tile
    """
    # --- ZPool over channel slabs: pure elementwise VPU max / add --------------
    x0 = x_ref[0, 0].astype(jnp.float32)                   # (SB, 128) full slab
    x_max = x0
    x_sum = x0
    for k in range(1, c1):                                 # static, tiny unroll
        xk = x_ref[0, k].astype(jnp.float32)
        x_max = jnp.maximum(x_max, xk)
        x_sum = x_sum + xk

    # --- conv2 (1x1, 2 taps) + BN folded -> SiLU -> sigmoid gate ---------------
    z = x_max * p2_ref[0] + x_sum * p2_ref[1] + p2_ref[2]
    z = z * jax.nn.sigmoid(z)                              # SiLU
    scale = jax.nn.sigmoid(z)                              # (SB, 128)

    # --- conv1 (1x1, BN folded) + SiLU: scalar-splat FMAs over full slabs ------
    for j in range(c2):
        y = x_ref[0, 0].astype(jnp.float32) * w1_ref[j * c1] + b1_ref[j]
        for k in range(1, c1):
            y = y + x_ref[0, k].astype(jnp.float32) * w1_ref[j * c1 + k]
        y = y * jax.nn.sigmoid(y)                          # SiLU
        o_ref[0, j] = (y * scale).astype(o_ref.dtype)


def attention_gate_mxu_kernel(p2_ref, x_ref, w1_ref, b1_ref, o_ref):
    """One (batch, spatial-tile) grid step for larger channel counts.

    p2_ref : SMEM (4,)        folded conv2+BN taps
    x_ref  : VMEM (1, C1, T)  channels on sublanes, pixels on lanes
    w1_ref : VMEM (C2, C1)    folded conv1 weight (resident, native dtype)
    b1_ref : VMEM (C2, 1)     folded conv1 bias (f32)
    o_ref  : VMEM (1, C2, T)  output tile
    """
    x = x_ref[0]                                           # (C1, T), native dtype
    xf = x.astype(jnp.float32)
    x_max = jnp.max(xf, axis=0, keepdims=True)             # (1, T) sublane reduce
    x_sum = jnp.sum(xf, axis=0, keepdims=True)             # (1/C1 folded in p2[1])
    z = x_max * p2_ref[0] + x_sum * p2_ref[1] + p2_ref[2]
    z = z * jax.nn.sigmoid(z)                              # SiLU
    scale = jax.nn.sigmoid(z)                              # (1, T)

    # Native-dtype operands into the MXU (no bf16->f32 upcast); f32 accumulation.
    y = jnp.dot(w1_ref[...], x, preferred_element_type=jnp.float32) + b1_ref[...]
    y = y * jax.nn.sigmoid(y)                              # SiLU
    o_ref[0] = (y * scale).astype(o_ref.dtype)


# ----------------------------------------------------------------------------- sizing helpers
def _vmem_cap_bytes():
    """Generation-aware usable-VMEM cap (leave compiler scratch headroom)."""
    try:
        cap = int(pltpu.get_tpu_info().vmem_capacity_bytes)
    except Exception:  # be conservative if the query is unavailable
        cap = 64 << 20
    return (100 << 20) if cap >= (120 << 20) else (48 << 20)


def _valid_sbs(total_slabs):
    """Spatial block sizes (in 128-lane slabs) legal for a (.., SB, 128) block:
    divisors of total_slabs that are a multiple of 8 or the full extent."""
    return sorted(d for d in range(1, total_slabs + 1)
                  if total_slabs % d == 0 and (d % 8 == 0 or d == total_slabs))


def _pick_sb(cands, total_slabs, target_sb, min_spatial_steps):
    """Largest legal SB <= target that still leaves enough grid steps."""
    ok = [d for d in cands if total_slabs // d >= min_spatial_steps] or cands
    below = [d for d in ok if d <= target_sb]
    return max(below) if below else min(ok)


def _vmem_need(c1, c2, sb, isize, vmem_resident_bytes):
    """Double-buffered tiles + f32 temporaries + resident weights + slack."""
    tile_in = c1 * sb * 128 * isize
    tile_out = c2 * sb * 128 * isize
    temps = (c2 + 4) * sb * 128 * 4
    return 2 * (tile_in + tile_out) + temps + vmem_resident_bytes + (1 << 20)


# ----------------------------------------------------------------------------- wrapper
def attention_gate(x_nchw, w1_fold, b1_fold, p2):
    """x_nchw: (N, C1, H, W); w1_fold: (C2, C1) BN-folded; b1_fold: (C2,);
    p2: [max tap, mean tap, bias, pad] (conv2+BN folded).  Returns (N, C2, H, W)."""
    N, C1, H, W = x_nchw.shape
    C2 = w1_fold.shape[0]
    HW = H * W
    isize = jnp.dtype(x_nchw.dtype).itemsize

    # Lane-pad the spatial axis so every tile is lane-dense (multiple of 128).
    HWp = ((HW + 127) // 128) * 128
    x3 = x_nchw.reshape(N, C1, HW)                          # free view
    if HWp != HW:
        x3 = jnp.pad(x3, ((0, 0), (0, 0), (0, HWp - HW)))
    total_slabs = HWp // 128

    # Fold 1/C1 of the mean into the conv2 tap so the kernel only needs a sum.
    p2_kern = jnp.stack([p2[0], p2[1] / jnp.float32(C1), p2[2],
                         jnp.float32(0.0)]).astype(jnp.float32)

    # Tiny channels -> full-vreg slab/VPU path (bounded unroll); else MXU path.
    use_slab = (C1 <= 8) and (C2 <= 32)
    resident = 0 if use_slab else (C2 * C1 * isize + C2 * 4)

    # Channel-aware spatial tile: aim for a few MiB of HBM payload per grid step,
    # but keep >= 2 total grid steps so a dual-TC chip (v7x) stays balanced.
    target_bytes = 3 << 20
    target_sb = max(1, target_bytes // ((C1 + C2) * isize * 128))
    min_spatial_steps = 1 if N >= 2 else 2
    cands = _valid_sbs(total_slabs)
    sb = _pick_sb(cands, total_slabs, target_sb, min_spatial_steps)

    # If the working set would not fit this generation's VMEM budget, shrink the
    # tile (never silently clamp the limit below the real need).
    vmem_cap = _vmem_cap_bytes()
    while True:
        need = _vmem_need(C1, C2, sb, isize, resident)
        if need <= vmem_cap:
            break
        smaller = [d for d in cands if d < sb]
        if not smaller:
            break
        sb = max(smaller)

    grid = (N, total_slabs // sb)
    vmem_limit = int(min(max(need + (4 << 20), 8 << 20), vmem_cap))
    cparams = pltpu.CompilerParams(
        dimension_semantics=("parallel", "parallel"),
        vmem_limit_bytes=vmem_limit)

    if use_slab:
        # (N, C1, HWp) -> (N, C1, HWp/128, 128): free row-major view; each channel
        # becomes a dense sublane x lane slab inside the tile.
        x4 = x3.reshape(N, C1, total_slabs, 128)
        w1_flat = w1_fold.reshape(-1).astype(jnp.float32)   # scalar splats in SMEM
        b1_vec = b1_fold.reshape(-1).astype(jnp.float32)
        out4 = pl.pallas_call(
            functools.partial(attention_gate_slab_kernel, c1=C1, c2=C2),
            out_shape=jax.ShapeDtypeStruct((N, C2, total_slabs, 128), x_nchw.dtype),
            grid=grid,
            in_specs=[
                pl.BlockSpec(memory_space=pltpu.SMEM),                     # p2
                pl.BlockSpec(memory_space=pltpu.SMEM),                     # w1 flat
                pl.BlockSpec(memory_space=pltpu.SMEM),                     # b1
                pl.BlockSpec((1, C1, sb, 128), lambda n, s: (n, 0, s, 0)),  # x tile
            ],
            out_specs=pl.BlockSpec((1, C2, sb, 128), lambda n, s: (n, 0, s, 0)),
            compiler_params=cparams,
        )(p2_kern, w1_flat, b1_vec, x4)
        out3 = out4.reshape(N, C2, HWp)
    else:
        thw = sb * 128
        b1_2d = b1_fold.reshape(C2, 1).astype(jnp.float32)
        out3 = pl.pallas_call(
            attention_gate_mxu_kernel,
            out_shape=jax.ShapeDtypeStruct((N, C2, HWp), x_nchw.dtype),
            grid=grid,
            in_specs=[
                pl.BlockSpec(memory_space=pltpu.SMEM),                 # p2 scalars
                pl.BlockSpec((1, C1, thw), lambda n, s: (n, 0, s)),    # x tile
                pl.BlockSpec((C2, C1), lambda n, s: (0, 0)),           # w1 (resident)
                pl.BlockSpec((C2, 1), lambda n, s: (0, 0)),            # b1 (resident)
            ],
            out_specs=pl.BlockSpec((1, C2, thw), lambda n, s: (n, 0, s)),
            compiler_params=cparams,
        )(p2_kern, x3, w1_fold, b1_2d)

    if HWp != HW:
        out3 = out3[:, :, :HW]
    return out3.reshape(N, C2, H, W)


# ----------------------------------------------------------------------------- reference & test
def _reference(x_nchw, w1_fold, b1_fold, p2):
    # Pure-JAX reference mirroring the PyTorch forward (BN folded, eval mode).
    x = x_nchw.astype(jnp.float32)
    x_max = jnp.max(x, axis=1, keepdims=True)
    x_mean = jnp.mean(x, axis=1, keepdims=True)
    z = x_max * p2[0] + x_mean * p2[1] + p2[2]
    z = z * jax.nn.sigmoid(z)
    scale = jax.nn.sigmoid(z)                              # (N,1,H,W)
    y = jnp.einsum("nchw,dc->ndhw", x, w1_fold) + b1_fold[None, :, None, None]
    y = y * jax.nn.sigmoid(y)
    return y * scale


if __name__ == "__main__":
    key = jax.random.PRNGKey(0)
    N, C1, C2, H, W = 2, 4, 8, 16, 16
    eps = 1e-5

    ks = jax.random.split(key, 10)
    x = jax.random.normal(ks[0], (N, C1, H, W), dtype=jnp.float32)

    # conv1: Conv2d(C1, C2, 1, bias=False) weight (C2, C1) + BatchNorm2d(C2)
    w1_conv = jax.random.normal(ks[1], (C2, C1), dtype=jnp.float32) * 0.3
    g1 = 1.0 + 0.1 * jax.random.normal(ks[2], (C2,), dtype=jnp.float32)
    beta1 = 0.1 * jax.random.normal(ks[3], (C2,), dtype=jnp.float32)
    mean1 = 0.1 * jax.random.normal(ks[4], (C2,), dtype=jnp.float32)
    var1 = jnp.abs(jax.random.normal(ks[5], (C2,), dtype=jnp.float32)) * 0.5 + 0.5
    s1 = g1 / jnp.sqrt(var1 + eps)
    w1_fold = w1_conv * s1[:, None]              # (C2, C1), BN scale folded
    b1_fold = beta1 - mean1 * s1                 # (C2,)

    # conv2: Conv2d(2, 1, 1, bias=False) weight (2 taps) + BatchNorm2d(1)
    w2_conv = jax.random.normal(ks[6], (2,), dtype=jnp.float32) * 0.5
    g2 = 1.0 + 0.1 * jax.random.normal(ks[7], (), dtype=jnp.float32)
    beta2 = 0.1 * jax.random.normal(ks[8], (), dtype=jnp.float32)
    mean2 = 0.1 * jax.random.normal(ks[9], (), dtype=jnp.float32)
    var2 = jnp.float32(0.8)
    s2 = g2 / jnp.sqrt(var2 + eps)
    p2 = jnp.array([w2_conv[0] * s2,             # a : folded max tap
                    w2_conv[1] * s2,             # b : folded mean tap
                    beta2 - mean2 * s2,          # c : folded bias
                    0.0], dtype=jnp.float32)     # pad

    out = attention_gate(x, w1_fold, b1_fold, p2)
    out = jax.block_until_ready(out)

    ref = _reference(x, w1_fold, b1_fold, p2)
    assert out.shape == (N, C2, H, W)
    assert jnp.allclose(out, ref, atol=1e-5, rtol=1e-5), "mismatch vs reference"

    print("KERNEL_OK")
</pallas_src>

<mosaic_0001>
module attributes {stable_mosaic.version = 11 : i64} {
  func.func @attention_gate_slab_kernel(%arg0: i32, %arg1: i32, %arg2: memref<4xf32, #tpu.memory_space<smem>>, %arg3: memref<32xf32, #tpu.memory_space<smem>>, %arg4: memref<8xf32, #tpu.memory_space<smem>>, %arg5: memref<1x4x2x128xf32, #tpu.memory_space<vmem>>, %arg6: memref<1x8x2x128xf32, #tpu.memory_space<vmem>>) attributes {dimension_semantics = [#tpu.dimension_semantics<parallel>, #tpu.dimension_semantics<parallel>], iteration_bounds = array<i64: 2, 1>, scalar_prefetch = 0 : i64, scratch_operands = 0 : i64, tpu.core_type = #tpu.core_type<tc>, window_params = [{transform_indices = @transform_0, window_bounds = array<i64: 4>}, {transform_indices = @transform_1, window_bounds = array<i64: 32>}, {transform_indices = @transform_2, window_bounds = array<i64: 8>}, {transform_indices = @transform_3, window_bounds = array<i64: 1, 4, 2, 128>}, {transform_indices = @transform_4, window_bounds = array<i64: 1, 8, 2, 128>}]} {
    %c0 = arith.constant 0 : index
    %c0_0 = arith.constant 0 : index
    %c0_1 = arith.constant 0 : index
    %c0_2 = arith.constant 0 : index
    %0 = vector.load %arg5[%c0, %c0_0, %c0_1, %c0_2] : memref<1x4x2x128xf32, #tpu.memory_space<vmem>>, vector<1x1x2x128xf32>
    %1 = vector.shape_cast %0 : vector<1x1x2x128xf32> to vector<2x128xf32>
    %c0_3 = arith.constant 0 : index
    %c1 = arith.constant 1 : index
    %c0_4 = arith.constant 0 : index
    %c0_5 = arith.constant 0 : index
    %2 = vector.load %arg5[%c0_3, %c1, %c0_4, %c0_5] : memref<1x4x2x128xf32, #tpu.memory_space<vmem>>, vector<1x1x2x128xf32>
    %3 = vector.shape_cast %2 : vector<1x1x2x128xf32> to vector<2x128xf32>
    %4 = arith.maximumf %1, %3 : vector<2x128xf32>
    %5 = arith.addf %1, %3 : vector<2x128xf32>
    %c0_6 = arith.constant 0 : index
    %c2 = arith.constant 2 : index
    %c0_7 = arith.constant 0 : index
    %c0_8 = arith.constant 0 : index
    %6 = vector.load %arg5[%c0_6, %c2, %c0_7, %c0_8] : memref<1x4x2x128xf32, #tpu.memory_space<vmem>>, vector<1x1x2x128xf32>
    %7 = vector.shape_cast %6 : vector<1x1x2x128xf32> to vector<2x128xf32>
    %8 = arith.maximumf %4, %7 : vector<2x128xf32>
    %9 = arith.addf %5, %7 : vector<2x128xf32>
    %c0_9 = arith.constant 0 : index
    %c3 = arith.constant 3 : index
    %c0_10 = arith.constant 0 : index
    %c0_11 = arith.constant 0 : index
    %10 = vector.load %arg5[%c0_9, %c3, %c0_10, %c0_11] : memref<1x4x2x128xf32, #tpu.memory_space<vmem>>, vector<1x1x2x128xf32>
    %11 = vector.shape_cast %10 : vector<1x1x2x128xf32> to vector<2x128xf32>
    %12 = arith.maximumf %8, %11 : vector<2x128xf32>
    %13 = arith.addf %9, %11 : vector<2x128xf32>
    %c0_12 = arith.constant 0 : index
    %14 = memref.load %arg2[%c0_12] : memref<4xf32, #tpu.memory_space<smem>>
    %15 = vector.broadcast %14 : f32 to vector<2x128xf32>
    %16 = arith.mulf %12, %15 : vector<2x128xf32>
    %c1_13 = arith.constant 1 : index
    %17 = memref.load %arg2[%c1_13] : memref<4xf32, #tpu.memory_space<smem>>
    %18 = vector.broadcast %17 : f32 to vector<2x128xf32>
    %19 = arith.mulf %13, %18 : vector<2x128xf32>
    %20 = arith.addf %16, %19 : vector<2x128xf32>
    %c2_14 = arith.constant 2 : index
    %21 = memref.load %arg2[%c2_14] : memref<4xf32, #tpu.memory_space<smem>>
    %22 = vector.broadcast %21 : f32 to vector<2x128xf32>
    %23 = arith.addf %20, %22 : vector<2x128xf32>
    %24 = arith.negf %23 : vector<2x128xf32>
    %25 = math.exp %24 : vector<2x128xf32>
    %cst = arith.constant 1.000000e+00 : f32
    %26 = vector.broadcast %cst : f32 to vector<2x128xf32>
    %27 = arith.addf %26, %25 : vector<2x128xf32>
    %28 = arith.divf %26, %27 : vector<2x128xf32>
    %29 = arith.mulf %23, %28 : vector<2x128xf32>
    %30 = arith.negf %29 : vector<2x128xf32>
    %31 = math.exp %30 : vector<2x128xf32>
    %cst_15 = arith.constant 1.000000e+00 : f32
    %32 = vector.broadcast %cst_15 : f32 to vector<2x128xf32>
    %33 = arith.addf %32, %31 : vector<2x128xf32>
    %34 = arith.divf %32, %33 : vector<2x128xf32>
    %c0_16 = arith.constant 0 : index
    %c0_17 = arith.constant 0 : index
    %c0_18 = arith.constant 0 : index
    %c0_19 = arith.constant 0 : index
    %35 = vector.load %arg5[%c0_16, %c0_17, %c0_18, %c0_19] : memref<1x4x2x128xf32, #tpu.memory_space<vmem>>, vector<1x1x2x128xf32>
    %36 = vector.shape_cast %35 : vector<1x1x2x128xf32> to vector<2x128xf32>
    %c0_20 = arith.constant 0 : index
    %37 = memref.load %arg3[%c0_20] : memref<32xf32, #tpu.memory_space<smem>>
    %38 = vector.broadcast %37 : f32 to vector<2x128xf32>
    %39 = arith.mulf %36, %38 : vector<2x128xf32>
    %c0_21 = arith.constant 0 : index
    %40 = memref.load %arg4[%c0_21] : memref<8xf32, #tpu.memory_space<smem>>
    %41 = vector.broadcast %40 : f32 to vector<2x128xf32>
    %42 = arith.addf %39, %41 : vector<2x128xf32>
    %c0_22 = arith.constant 0 : index
    %c1_23 = arith.constant 1 : index
    %c0_24 = arith.constant 0 : index
    %c0_25 = arith.constant 0 : index
    %43 = vector.load %arg5[%c0_22, %c1_23, %c0_24, %c0_25] : memref<1x4x2x128xf32, #tpu.memory_space<vmem>>, vector<1x1x2x128xf32>
    %44 = vector.shape_cast %43 : vector<1x1x2x128xf32> to vector<2x128xf32>
    %c1_26 = arith.constant 1 : index
    %45 = memref.load %arg3[%c1_26] : memref<32xf32, #tpu.memory_space<smem>>
    %46 = vector.broadcast %45 : f32 to vector<2x128xf32>
    %47 = arith.mulf %44, %46 : vector<2x128xf32>
    %48 = arith.addf %42, %47 : vector<2x128xf32>
    %c0_27 = arith.constant 0 : index
    %c2_28 = arith.constant 2 : index
    %c0_29 = arith.constant 0 : index
    %c0_30 = arith.constant 0 : index
    %49 = vector.load %arg5[%c0_27, %c2_28, %c0_29, %c0_30] : memref<1x4x2x128xf32, #tpu.memory_space<vmem>>, vector<1x1x2x128xf32>
    %50 = vector.shape_cast %49 : vector<1x1x2x128xf32> to vector<2x128xf32>
    %c2_31 = arith.constant 2 : index
    %51 = memref.load %arg3[%c2_31] : memref<32xf32, #tpu.memory_space<smem>>
    %52 = vector.broadcast %51 : f32 to vector<2x128xf32>
    %53 = arith.mulf %50, %52 : vector<2x128xf32>
    %54 = arith.addf %48, %53 : vector<2x128xf32>
    %c0_32 = arith.constant 0 : index
    %c3_33 = arith.constant 3 : index
    %c0_34 = arith.constant 0 : index
    %c0_35 = arith.constant 0 : index
    %55 = vector.load %arg5[%c0_32, %c3_33, %c0_34, %c0_35] : memref<1x4x2x128xf32, #tpu.memory_space<vmem>>, vector<1x1x2x128xf32>
    %56 = vector.shape_cast %55 : vector<1x1x2x128xf32> to vector<2x128xf32>
    %c3_36 = arith.constant 3 : index
    %57 = memref.load %arg3[%c3_36] : memref<32xf32, #tpu.memory_space<smem>>
    %58 = vector.broadcast %57 : f32 to vector<2x128xf32>
    %59 = arith.mulf %56, %58 : vector<2x128xf32>
    %60 = arith.addf %54, %59 : vector<2x128xf32>
    %61 = arith.negf %60 : vector<2x128xf32>
    %62 = math.exp %61 : vector<2x128xf32>
    %cst_37 = arith.constant 1.000000e+00 : f32
    %63 = vector.broadcast %cst_37 : f32 to vector<2x128xf32>
    %64 = arith.addf %63, %62 : vector<2x128xf32>
    %65 = arith.divf %63, %64 : vector<2x128xf32>
    %66 = arith.mulf %60, %65 : vector<2x128xf32>
    %67 = arith.mulf %66, %34 : vector<2x128xf32>
    %c0_38 = arith.constant 0 : index
    %c0_39 = arith.constant 0 : index
    %c0_40 = arith.constant 0 : index
    %c0_41 = arith.constant 0 : index
    %68 = vector.load %arg6[%c0_38, %c0_39, %c0_40, %c0_41] : memref<1x8x2x128xf32, #tpu.memory_space<vmem>>, vector<1x1x2x128xf32>
    %69 = vector.shape_cast %68 : vector<1x1x2x128xf32> to vector<2x128xf32>
    %70 = vector.shape_cast %67 : vector<2x128xf32> to vector<1x1x2x128xf32>
    tpu.vector_store %arg6[%c0_38, %c0_39, %c0_40, %c0_41], %70 {strides = array<i32>} : memref<1x8x2x128xf32, #tpu.memory_space<vmem>>, vector<1x1x2x128xf32>,
    %c0_42 = arith.constant 0 : index
    %c0_43 = arith.constant 0 : index
    %c0_44 = arith.constant 0 : index
    %c0_45 = arith.constant 0 : index
    %71 = vector.load %arg5[%c0_42, %c0_43, %c0_44, %c0_45] : memref<1x4x2x128xf32, #tpu.memory_space<vmem>>, vector<1x1x2x128xf32>
    %72 = vector.shape_cast %71 : vector<1x1x2x128xf32> to vector<2x128xf32>
    %c4 = arith.constant 4 : index
    %73 = memref.load %arg3[%c4] : memref<32xf32, #tpu.memory_space<smem>>
    %74 = vector.broadcast %73 : f32 to vector<2x128xf32>
    %75 = arith.mulf %72, %74 : vector<2x128xf32>
    %c1_46 = arith.constant 1 : index
    %76 = memref.load %arg4[%c1_46] : memref<8xf32, #tpu.memory_space<smem>>
    %77 = vector.broadcast %76 : f32 to vector<2x128xf32>
    %78 = arith.addf %75, %77 : vector<2x128xf32>
    %c0_47 = arith.constant 0 : index
    %c1_48 = arith.constant 1 : index
    %c0_49 = arith.constant 0 : index
    %c0_50 = arith.constant 0 : index
    %79 = vector.load %arg5[%c0_47, %c1_48, %c0_49, %c0_50] : memref<1x4x2x128xf32, #tpu.memory_space<vmem>>, vector<1x1x2x128xf32>
    %80 = vector.shape_cast %79 : vector<1x1x2x128xf32> to vector<2x128xf32>
    %c5 = arith.constant 5 : index
    %81 = memref.load %arg3[%c5] : memref<32xf32, #tpu.memory_space<smem>>
    %82 = vector.broadcast %81 : f32 to vector<2x128xf32>
    %83 = arith.mulf %80, %82 : vector<2x128xf32>
    %84 = arith.addf %78, %83 : vector<2x128xf32>
    %c0_51 = arith.constant 0 : index
    %c2_52 = arith.constant 2 : index
    %c0_53 = arith.constant 0 : index
    %c0_54 = arith.constant 0 : index
    %85 = vector.load %arg5[%c0_51, %c2_52, %c0_53, %c0_54] : memref<1x4x2x128xf32, #tpu.memory_space<vmem>>, vector<1x1x2x128xf32>
    %86 = vector.shape_cast %85 : vector<1x1x2x128xf32> to vector<2x128xf32>
    %c6 = arith.constant 6 : index
    %87 = memref.load %arg3[%c6] : memref<32xf32, #tpu.memory_space<smem>>
    %88 = vector.broadcast %87 : f32 to vector<2x128xf32>
    %89 = arith.mulf %86, %88 : vector<2x128xf32>
    %90 = arith.addf %84, %89 : vector<2x128xf32>
    %c0_55 = arith.constant 0 : index
    %c3_56 = arith.constant 3 : index
    %c0_57 = arith.constant 0 : index
    %c0_58 = arith.constant 0 : index
    %91 = vector.load %arg5[%c0_55, %c3_56, %c0_57, %c0_58] : memref<1x4x2x128xf32, #tpu.memory_space<vmem>>, vector<1x1x2x128xf32>
    %92 = vector.shape_cast %91 : vector<1x1x2x128xf32> to vector<2x128xf32>
    %c7 = arith.constant 7 : index
    %93 = memref.load %arg3[%c7] : memref<32xf32, #tpu.memory_space<smem>>
    %94 = vector.broadcast %93 : f32 to vector<2x128xf32>
    %95 = arith.mulf %92, %94 : vector<2x128xf32>
    %96 = arith.addf %90, %95 : vector<2x128xf32>
    %97 = arith.negf %96 : vector<2x128xf32>
    %98 = math.exp %97 : vector<2x128xf32>
    %cst_59 = arith.constant 1.000000e+00 : f32
    %99 = vector.broadcast %cst_59 : f32 to vector<2x128xf32>
    %100 = arith.addf %99, %98 : vector<2x128xf32>
    %101 = arith.divf %99, %100 : vector<2x128xf32>
    %102 = arith.mulf %96, %101 : vector<2x128xf32>
    %103 = arith.mulf %102, %34 : vector<2x128xf32>
    %c0_60 = arith.constant 0 : index
    %c1_61 = arith.constant 1 : index
    %c0_62 = arith.constant 0 : index
    %c0_63 = arith.constant 0 : index
    %104 = vector.load %arg6[%c0_60, %c1_61, %c0_62, %c0_63] : memref<1x8x2x128xf32, #tpu.memory_space<vmem>>, vector<1x1x2x128xf32>
    %105 = vector.shape_cast %104 : vector<1x1x2x128xf32> to vector<2x128xf32>
    %106 = vector.shape_cast %103 : vector<2x128xf32> to vector<1x1x2x128xf32>
    tpu.vector_store %arg6[%c0_60, %c1_61, %c0_62, %c0_63], %106 {strides = array<i32>} : memref<1x8x2x128xf32, #tpu.memory_space<vmem>>, vector<1x1x2x128xf32>,
    %c0_64 = arith.constant 0 : index
    %c0_65 = arith.constant 0 : index
    %c0_66 = arith.constant 0 : index
    %c0_67 = arith.constant 0 : index
    %107 = vector.load %arg5[%c0_64, %c0_65, %c0_66, %c0_67] : memref<1x4x2x128xf32, #tpu.memory_space<vmem>>, vector<1x1x2x128xf32>
    %108 = vector.shape_cast %107 : vector<1x1x2x128xf32> to vector<2x128xf32>
    %c8 = arith.constant 8 : index
    %109 = memref.load %arg3[%c8] : memref<32xf32, #tpu.memory_space<smem>>
    %110 = vector.broadcast %109 : f32 to vector<2x128xf32>
    %111 = arith.mulf %108, %110 : vector<2x128xf32>
    %c2_68 = arith.constant 2 : index
    %112 = memref.load %arg4[%c2_68] : memref<8xf32, #tpu.memory_space<smem>>
    %113 = vector.broadcast %112 : f32 to vector<2x128xf32>
    %114 = arith.addf %111, %113 : vector<2x128xf32>
    %c0_69 = arith.constant 0 : index
    %c1_70 = arith.constant 1 : index
    %c0_71 = arith.constant 0 : index
    %c0_72 = arith.constant 0 : index
    %115 = vector.load %arg5[%c0_69, %c1_70, %c0_71, %c0_72] : memref<1x4x2x128xf32, #tpu.memory_space<vmem>>, vector<1x1x2x128xf32>
    %116 = vector.shape_cast %115 : vector<1x1x2x128xf32> to vector<2x128xf32>
    %c9 = arith.constant 9 : index
    %117 = memref.load %arg3[%c9] : memref<32xf32, #tpu.memory_space<smem>>
    %118 = vector.broadcast %117 : f32 to vector<2x128xf32>
    %119 = arith.mulf %116, %118 : vector<2x128xf32>
    %120 = arith.addf %114, %119 : vector<2x128xf32>
    %c0_73 = arith.constant 0 : index
    %c2_74 = arith.constant 2 : index
    %c0_75 = arith.constant 0 : index
    %c0_76 = arith.constant 0 : index
    %121 = vector.load %arg5[%c0_73, %c2_74, %c0_75, %c0_76] : memref<1x4x2x128xf32, #tpu.memory_space<vmem>>, vector<1x1x2x128xf32>
    %122 = vector.shape_cast %121 : vector<1x1x2x128xf32> to vector<2x128xf32>
    %c10 = arith.constant 10 : index
    %123 = memref.load %arg3[%c10] : memref<32xf32, #tpu.memory_space<smem>>
    %124 = vector.broadcast %123 : f32 to vector<2x128xf32>
    %125 = arith.mulf %122, %124 : vector<2x128xf32>
    %126 = arith.addf %120, %125 : vector<2x128xf32>
    %c0_77 = arith.constant 0 : index
    %c3_78 = arith.constant 3 : index
    %c0_79 = arith.constant 0 : index
    %c0_80 = arith.constant 0 : index
    %127 = vector.load %arg5[%c0_77, %c3_78, %c0_79, %c0_80] : memref<1x4x2x128xf32, #tpu.memory_space<vmem>>, vector<1x1x2x128xf32>
    %128 = vector.shape_cast %127 : vector<1x1x2x128xf32> to vector<2x128xf32>
    %c11 = arith.constant 11 : index
    %129 = memref.load %arg3[%c11] : memref<32xf32, #tpu.memory_space<smem>>
    %130 = vector.broadcast %129 : f32 to vector<2x128xf32>
    %131 = arith.mulf %128, %130 : vector<2x128xf32>
    %132 = arith.addf %126, %131 : vector<2x128xf32>
    %133 = arith.negf %132 : vector<2x128xf32>
    %134 = math.exp %133 : vector<2x128xf32>
    %cst_81 = arith.constant 1.000000e+00 : f32
    %135 = vector.broadcast %cst_81 : f32 to vector<2x128xf32>
    %136 = arith.addf %135, %134 : vector<2x128xf32>
    %137 = arith.divf %135, %136 : vector<2x128xf32>
    %138 = arith.mulf %132, %137 : vector<2x128xf32>
    %139 = arith.mulf %138, %34 : vector<2x128xf32>
    %c0_82 = arith.constant 0 : index
    %c2_83 = arith.constant 2 : index
    %c0_84 = arith.constant 0 : index
    %c0_85 = arith.constant 0 : index
    %140 = vector.load %arg6[%c0_82, %c2_83, %c0_84, %c0_85] : memref<1x8x2x128xf32, #tpu.memory_space<vmem>>, vector<1x1x2x128xf32>
    %141 = vector.shape_cast %140 : vector<1x1x2x128xf32> to vector<2x128xf32>
    %142 = vector.shape_cast %139 : vector<2x128xf32> to vector<1x1x2x128xf32>
    tpu.vector_store %arg6[%c0_82, %c2_83, %c0_84, %c0_85], %142 {strides = array<i32>} : memref<1x8x2x128xf32, #tpu.memory_space<vmem>>, vector<1x1x2x128xf32>,
    %c0_86 = arith.constant 0 : index
    %c0_87 = arith.constant 0 : index
    %c0_88 = arith.constant 0 : index
    %c0_89 = arith.constant 0 : index
    %143 = vector.load %arg5[%c0_86, %c0_87, %c0_88, %c0_89] : memref<1x4x2x128xf32, #tpu.memory_space<vmem>>, vector<1x1x2x128xf32>
    %144 = vector.shape_cast %143 : vector<1x1x2x128xf32> to vector<2x128xf32>
    %c12 = arith.constant 12 : index
    %145 = memref.load %arg3[%c12] : memref<32xf32, #tpu.memory_space<smem>>
    %146 = vector.broadcast %145 : f32 to vector<2x128xf32>
    %147 = arith.mulf %144, %146 : vector<2x128xf32>
    %c3_90 = arith.constant 3 : index
    %148 = memref.load %arg4[%c3_90] : memref<8xf32, #tpu.memory_space<smem>>
    %149 = vector.broadcast %148 : f32 to vector<2x128xf32>
    %150 = arith.addf %147, %149 : vector<2x128xf32>
    %c0_91 = arith.constant 0 : index
    %c1_92 = arith.constant 1 : index
    %c0_93 = arith.constant 0 : index
    %c0_94 = arith.constant 0 : index
    %151 = vector.load %arg5[%c0_91, %c1_92, %c0_93, %c0_94] : memref<1x4x2x128xf32, #tpu.memory_space<vmem>>, vector<1x1x2x128xf32>
    %152 = vector.shape_cast %151 : vector<1x1x2x128xf32> to vector<2x128xf32>
    %c13 = arith.constant 13 : index
    %153 = memref.load %arg3[%c13] : memref<32xf32, #tpu.memory_space<smem>>
    %154 = vector.broadcast %153 : f32 to vector<2x128xf32>
    %155 = arith.mulf %152, %154 : vector<2x128xf32>
    %156 = arith.addf %150, %155 : vector<2x128xf32>
    %c0_95 = arith.constant 0 : index
    %c2_96 = arith.constant 2 : index
    %c0_97 = arith.constant 0 : index
    %c0_98 = arith.constant 0 : index
    %157 = vector.load %arg5[%c0_95, %c2_96, %c0_97, %c0_98] : memref<1x4x2x128xf32, #tpu.memory_space<vmem>>, vector<1x1x2x128xf32>
    %158 = vector.shape_cast %157 : vector<1x1x2x128xf32> to vector<2x128xf32>
    %c14 = arith.constant 14 : index
    %159 = memref.load %arg3[%c14] : memref<32xf32, #tpu.memory_space<smem>>
    %160 = vector.broadcast %159 : f32 to vector<2x128xf32>
    %161 = arith.mulf %158, %160 : vector<2x128xf32>
    %162 = arith.addf %156, %161 : vector<2x128xf32>
    %c0_99 = arith.constant 0 : index
    %c3_100 = arith.constant 3 : index
    %c0_101 = arith.constant 0 : index
    %c0_102 = arith.constant 0 : index
    %163 = vector.load %arg5[%c0_99, %c3_100, %c0_101, %c0_102] : memref<1x4x2x128xf32, #tpu.memory_space<vmem>>, vector<1x1x2x128xf32>
    %164 = vector.shape_cast %163 : vector<1x1x2x128xf32> to vector<2x128xf32>
    %c15 = arith.constant 15 : index
    %165 = memref.load %arg3[%c15] : memref<32xf32, #tpu.memory_space<smem>>
    %166 = vector.broadcast %165 : f32 to vector<2x128xf32>
    %167 = arith.mulf %164, %166 : vector<2x128xf32>
    %168 = arith.addf %162, %167 : vector<2x128xf32>
    %169 = arith.negf %168 : vector<2x128xf32>
    %170 = math.exp %169 : vector<2x128xf32>
    %cst_103 = arith.constant 1.000000e+00 : f32
    %171 = vector.broadcast %cst_103 : f32 to vector<2x128xf32>
    %172 = arith.addf %171, %170 : vector<2x128xf32>
    %173 = arith.divf %171, %172 : vector<2x128xf32>
    %174 = arith.mulf %168, %173 : vector<2x128xf32>
    %175 = arith.mulf %174, %34 : vector<2x128xf32>
    %c0_104 = arith.constant 0 : index
    %c3_105 = arith.constant 3 : index
    %c0_106 = arith.constant 0 : index
    %c0_107 = arith.constant 0 : index
    %176 = vector.load %arg6[%c0_104, %c3_105, %c0_106, %c0_107] : memref<1x8x2x128xf32, #tpu.memory_space<vmem>>, vector<1x1x2x128xf32>
    %177 = vector.shape_cast %176 : vector<1x1x2x128xf32> to vector<2x128xf32>
    %178 = vector.shape_cast %175 : vector<2x128xf32> to vector<1x1x2x128xf32>
    tpu.vector_store %arg6[%c0_104, %c3_105, %c0_106, %c0_107], %178 {strides = array<i32>} : memref<1x8x2x128xf32, #tpu.memory_space<vmem>>, vector<1x1x2x128xf32>,
    %c0_108 = arith.constant 0 : index
    %c0_109 = arith.constant 0 : index
    %c0_110 = arith.constant 0 : index
    %c0_111 = arith.constant 0 : index
    %179 = vector.load %arg5[%c0_108, %c0_109, %c0_110, %c0_111] : memref<1x4x2x128xf32, #tpu.memory_space<vmem>>, vector<1x1x2x128xf32>
    %180 = vector.shape_cast %179 : vector<1x1x2x128xf32> to vector<2x128xf32>
    %c16 = arith.constant 16 : index
    %181 = memref.load %arg3[%c16] : memref<32xf32, #tpu.memory_space<smem>>
    %182 = vector.broadcast %181 : f32 to vector<2x128xf32>
    %183 = arith.mulf %180, %182 : vector<2x128xf32>
    %c4_112 = arith.constant 4 : index
    %184 = memref.load %arg4[%c4_112] : memref<8xf32, #tpu.memory_space<smem>>
    %185 = vector.broadcast %184 : f32 to vector<2x128xf32>
    %186 = arith.addf %183, %185 : vector<2x128xf32>
    %c0_113 = arith.constant 0 : index
    %c1_114 = arith.constant 1 : index
    %c0_115 = arith.constant 0 : index
    %c0_116 = arith.constant 0 : index
    %187 = vector.load %arg5[%c0_113, %c1_114, %c0_115, %c0_116] : memref<1x4x2x128xf32, #tpu.memory_space<vmem>>, vector<1x1x2x128xf32>
    %188 = vector.shape_cast %187 : vector<1x1x2x128xf32> to vector<2x128xf32>
    %c17 = arith.constant 17 : index
    %189 = memref.load %arg3[%c17] : memref<32xf32, #tpu.memory_space<smem>>
    %190 = vector.broadcast %189 : f32 to vector<2x128xf32>
    %191 = arith.mulf %188, %190 : vector<2x128xf32>
    %192 = arith.addf %186, %191 : vector<2x128xf32>
    %c0_117 = arith.constant 0 : index
    %c2_118 = arith.constant 2 : index
    %c0_119 = arith.constant 0 : index
    %c0_120 = arith.constant 0 : index
    %193 = vector.load %arg5[%c0_117, %c2_118, %c0_119, %c0_120] : memref<1x4x2x128xf32, #tpu.memory_space<vmem>>, vector<1x1x2x128xf32>
    %194 = vector.shape_cast %193 : vector<1x1x2x128xf32> to vector<2x128xf32>
    %c18 = arith.constant 18 : index
    %195 = memref.load %arg3[%c18] : memref<32xf32, #tpu.memory_space<smem>>
    %196 = vector.broadcast %195 : f32 to vector<2x128xf32>
    %197 = arith.mulf %194, %196 : vector<2x128xf32>
    %198 = arith.addf %192, %197 : vector<2x128xf32>
    %c0_121 = arith.constant 0 : index
    %c3_122 = arith.constant 3 : index
    %c0_123 = arith.constant 0 : index
    %c0_124 = arith.constant 0 : index
    %199 = vector.load %arg5[%c0_121, %c3_122, %c0_123, %c0_124] : memref<1x4x2x128xf32, #tpu.memory_space<vmem>>, vector<1x1x2x128xf32>
    %200 = vector.shape_cast %199 : vector<1x1x2x128xf32> to vector<2x128xf32>
    %c19 = arith.constant 19 : index
    %201 = memref.load %arg3[%c19] : memref<32xf32, #tpu.memory_space<smem>>
    %202 = vector.broadcast %201 : f32 to vector<2x128xf32>
    %203 = arith.mulf %200, %202 : vector<2x128xf32>
    %204 = arith.addf %198, %203 : vector<2x128xf32>
    %205 = arith.negf %204 : vector<2x128xf32>
    %206 = math.exp %205 : vector<2x128xf32>
    %cst_125 = arith.constant 1.000000e+00 : f32
    %207 = vector.broadcast %cst_125 : f32 to vector<2x128xf32>
    %208 = arith.addf %207, %206 : vector<2x128xf32>
    %209 = arith.divf %207, %208 : vector<2x128xf32>
    %210 = arith.mulf %204, %209 : vector<2x128xf32>
    %211 = arith.mulf %210, %34 : vector<2x128xf32>
    %c0_126 = arith.constant 0 : index
    %c4_127 = arith.constant 4 : index
    %c0_128 = arith.constant 0 : index
    %c0_129 = arith.constant 0 : index
    %212 = vector.load %arg6[%c0_126, %c4_127, %c0_128, %c0_129] : memref<1x8x2x128xf32, #tpu.memory_space<vmem>>, vector<1x1x2x128xf32>
    %213 = vector.shape_cast %212 : vector<1x1x2x128xf32> to vector<2x128xf32>
    %214 = vector.shape_cast %211 : vector<2x128xf32> to vector<1x1x2x128xf32>
    tpu.vector_store %arg6[%c0_126, %c4_127, %c0_128, %c0_129], %214 {strides = array<i32>} : memref<1x8x2x128xf32, #tpu.memory_space<vmem>>, vector<1x1x2x128xf32>,
    %c0_130 = arith.constant 0 : index
    %c0_131 = arith.constant 0 : index
    %c0_132 = arith.constant 0 : index
    %c0_133 = arith.constant 0 : index
    %215 = vector.load %arg5[%c0_130, %c0_131, %c0_132, %c0_133] : memref<1x4x2x128xf32, #tpu.memory_space<vmem>>, vector<1x1x2x128xf32>
    %216 = vector.shape_cast %215 : vector<1x1x2x128xf32> to vector<2x128xf32>
    %c20 = arith.constant 20 : index
    %217 = memref.load %arg3[%c20] : memref<32xf32, #tpu.memory_space<smem>>
    %218 = vector.broadcast %217 : f32 to vector<2x128xf32>
    %219 = arith.mulf %216, %218 : vector<2x128xf32>
    %c5_134 = arith.constant 5 : index
    %220 = memref.load %arg4[%c5_134] : memref<8xf32, #tpu.memory_space<smem>>
    %221 = vector.broadcast %220 : f32 to vector<2x128xf32>
    %222 = arith.addf %219, %221 : vector<2x128xf32>
    %c0_135 = arith.constant 0 : index
    %c1_136 = arith.constant 1 : index
    %c0_137 = arith.constant 0 : index
    %c0_138 = arith.constant 0 : index
    %223 = vector.load %arg5[%c0_135, %c1_136, %c0_137, %c0_138] : memref<1x4x2x128xf32, #tpu.memory_space<vmem>>, vector<1x1x2x128xf32>
    %224 = vector.shape_cast %223 : vector<1x1x2x128xf32> to vector<2x128xf32>
    %c21 = arith.constant 21 : index
    %225 = memref.load %arg3[%c21] : memref<32xf32, #tpu.memory_space<smem>>
    %226 = vector.broadcast %225 : f32 to vector<2x128xf32>
    %227 = arith.mulf %224, %226 : vector<2x128xf32>
    %228 = arith.addf %222, %227 : vector<2x128xf32>
    %c0_139 = arith.constant 0 : index
    %c2_140 = arith.constant 2 : index
    %c0_141 = arith.constant 0 : index
    %c0_142 = arith.constant 0 : index
    %229 = vector.load %arg5[%c0_139, %c2_140, %c0_141, %c0_142] : memref<1x4x2x128xf32, #tpu.memory_space<vmem>>, vector<1x1x2x128xf32>
    %230 = vector.shape_cast %229 : vector<1x1x2x128xf32> to vector<2x128xf32>
    %c22 = arith.constant 22 : index
    %231 = memref.load %arg3[%c22] : memref<32xf32, #tpu.memory_space<smem>>
    %232 = vector.broadcast %231 : f32 to vector<2x128xf32>
    %233 = arith.mulf %230, %232 : vector<2x128xf32>
    %234 = arith.addf %228, %233 : vector<2x128xf32>
    %c0_143 = arith.constant 0 : index
    %c3_144 = arith.constant 3 : index
    %c0_145 = arith.constant 0 : index
    %c0_146 = arith.constant 0 : index
    %235 = vector.load %arg5[%c0_143, %c3_144, %c0_145, %c0_146] : memref<1x4x2x128xf32, #tpu.memory_space<vmem>>, vector<1x1x2x128xf32>
    %236 = vector.shape_cast %235 : vector<1x1x2x128xf32> to vector<2x128xf32>
    %c23 = arith.constant 23 : index
    %237 = memref.load %arg3[%c23] : memref<32xf32, #tpu.memory_space<smem>>
    %238 = vector.broadcast %237 : f32 to vector<2x128xf32>
    %239 = arith.mulf %236, %238 : vector<2x128xf32>
    %240 = arith.addf %234, %239 : vector<2x128xf32>
    %241 = arith.negf %240 : vector<2x128xf32>
    %242 = math.exp %241 : vector<2x128xf32>
    %cst_147 = arith.constant 1.000000e+00 : f32
    %243 = vector.broadcast %cst_147 : f32 to vector<2x128xf32>
    %244 = arith.addf %243, %242 : vector<2x128xf32>
    %245 = arith.divf %243, %244 : vector<2x128xf32>
    %246 = arith.mulf %240, %245 : vector<2x128xf32>
    %247 = arith.mulf %246, %34 : vector<2x128xf32>
    %c0_148 = arith.constant 0 : index
    %c5_149 = arith.constant 5 : index
    %c0_150 = arith.constant 0 : index
    %c0_151 = arith.constant 0 : index
    %248 = vector.load %arg6[%c0_148, %c5_149, %c0_150, %c0_151] : memref<1x8x2x128xf32, #tpu.memory_space<vmem>>, vector<1x1x2x128xf32>
    %249 = vector.shape_cast %248 : vector<1x1x2x128xf32> to vector<2x128xf32>
    %250 = vector.shape_cast %247 : vector<2x128xf32> to vector<1x1x2x128xf32>
    tpu.vector_store %arg6[%c0_148, %c5_149, %c0_150, %c0_151], %250 {strides = array<i32>} : memref<1x8x2x128xf32, #tpu.memory_space<vmem>>, vector<1x1x2x128xf32>,
    %c0_152 = arith.constant 0 : index
    %c0_153 = arith.constant 0 : index
    %c0_154 = arith.constant 0 : index
    %c0_155 = arith.constant 0 : index
    %251 = vector.load %arg5[%c0_152, %c0_153, %c0_154, %c0_155] : memref<1x4x2x128xf32, #tpu.memory_space<vmem>>, vector<1x1x2x128xf32>
    %252 = vector.shape_cast %251 : vector<1x1x2x128xf32> to vector<2x128xf32>
    %c24 = arith.constant 24 : index
    %253 = memref.load %arg3[%c24] : memref<32xf32, #tpu.memory_space<smem>>
    %254 = vector.broadcast %253 : f32 to vector<2x128xf32>
    %255 = arith.mulf %252, %254 : vector<2x128xf32>
    %c6_156 = arith.constant 6 : index
    %256 = memref.load %arg4[%c6_156] : memref<8xf32, #tpu.memory_space<smem>>
    %257 = vector.broadcast %256 : f32 to vector<2x128xf32>
    %258 = arith.addf %255, %257 : vector<2x128xf32>
    %c0_157 = arith.constant 0 : index
    %c1_158 = arith.constant 1 : index
    %c0_159 = arith.constant 0 : index
    %c0_160 = arith.constant 0 : index
    %259 = vector.load %arg5[%c0_157, %c1_158, %c0_159, %c0_160] : memref<1x4x2x128xf32, #tpu.memory_space<vmem>>, vector<1x1x2x128xf32>
    %260 = vector.shape_cast %259 : vector<1x1x2x128xf32> to vector<2x128xf32>
    %c25 = arith.constant 25 : index
    %261 = memref.load %arg3[%c25] : memref<32xf32, #tpu.memory_space<smem>>
    %262 = vector.broadcast %261 : f32 to vector<2x128xf32>
    %263 = arith.mulf %260, %262 : vector<2x128xf32>
    %264 = arith.addf %258, %263 : vector<2x128xf32>
    %c0_161 = arith.constant 0 : index
    %c2_162 = arith.constant 2 : index
    %c0_163 = arith.constant 0 : index
    %c0_164 = arith.constant 0 : index
    %265 = vector.load %arg5[%c0_161, %c2_162, %c0_163, %c0_164] : memref<1x4x2x128xf32, #tpu.memory_space<vmem>>, vector<1x1x2x128xf32>
    %266 = vector.shape_cast %265 : vector<1x1x2x128xf32> to vector<2x128xf32>
    %c26 = arith.constant 26 : index
    %267 = memref.load %arg3[%c26] : memref<32xf32, #tpu.memory_space<smem>>
    %268 = vector.broadcast %267 : f32 to vector<2x128xf32>
    %269 = arith.mulf %266, %268 : vector<2x128xf32>
    %270 = arith.addf %264, %269 : vector<2x128xf32>
    %c0_165 = arith.constant 0 : index
    %c3_166 = arith.constant 3 : index
    %c0_167 = arith.constant 0 : index
    %c0_168 = arith.constant 0 : index
    %271 = vector.load %arg5[%c0_165, %c3_166, %c0_167, %c0_168] : memref<1x4x2x128xf32, #tpu.memory_space<vmem>>, vector<1x1x2x128xf32>
    %272 = vector.shape_cast %271 : vector<1x1x2x128xf32> to vector<2x128xf32>
    %c27 = arith.constant 27 : index
    %273 = memref.load %arg3[%c27] : memref<32xf32, #tpu.memory_space<smem>>
    %274 = vector.broadcast %273 : f32 to vector<2x128xf32>
    %275 = arith.mulf %272, %274 : vector<2x128xf32>
    %276 = arith.addf %270, %275 : vector<2x128xf32>
    %277 = arith.negf %276 : vector<2x128xf32>
    %278 = math.exp %277 : vector<2x128xf32>
    %cst_169 = arith.constant 1.000000e+00 : f32
    %279 = vector.broadcast %cst_169 : f32 to vector<2x128xf32>
    %280 = arith.addf %279, %278 : vector<2x128xf32>
    %281 = arith.divf %279, %280 : vector<2x128xf32>
    %282 = arith.mulf %276, %281 : vector<2x128xf32>
    %283 = arith.mulf %282, %34 : vector<2x128xf32>
    %c0_170 = arith.constant 0 : index
    %c6_171 = arith.constant 6 : index
    %c0_172 = arith.constant 0 : index
    %c0_173 = arith.constant 0 : index
    %284 = vector.load %arg6[%c0_170, %c6_171, %c0_172, %c0_173] : memref<1x8x2x128xf32, #tpu.memory_space<vmem>>, vector<1x1x2x128xf32>
    %285 = vector.shape_cast %284 : vector<1x1x2x128xf32> to vector<2x128xf32>
    %286 = vector.shape_cast %283 : vector<2x128xf32> to vector<1x1x2x128xf32>
    tpu.vector_store %arg6[%c0_170, %c6_171, %c0_172, %c0_173], %286 {strides = array<i32>} : memref<1x8x2x128xf32, #tpu.memory_space<vmem>>, vector<1x1x2x128xf32>,
    %c0_174 = arith.constant 0 : index
    %c0_175 = arith.constant 0 : index
    %c0_176 = arith.constant 0 : index
    %c0_177 = arith.constant 0 : index
    %287 = vector.load %arg5[%c0_174, %c0_175, %c0_176, %c0_177] : memref<1x4x2x128xf32, #tpu.memory_space<vmem>>, vector<1x1x2x128xf32>
    %288 = vector.shape_cast %287 : vector<1x1x2x128xf32> to vector<2x128xf32>
    %c28 = arith.constant 28 : index
    %289 = memref.load %arg3[%c28] : memref<32xf32, #tpu.memory_space<smem>>
    %290 = vector.broadcast %289 : f32 to vector<2x128xf32>
    %291 = arith.mulf %288, %290 : vector<2x128xf32>
    %c7_178 = arith.constant 7 : index
    %292 = memref.load %arg4[%c7_178] : memref<8xf32, #tpu.memory_space<smem>>
    %293 = vector.broadcast %292 : f32 to vector<2x128xf32>
    %294 = arith.addf %291, %293 : vector<2x128xf32>
    %c0_179 = arith.constant 0 : index
    %c1_180 = arith.constant 1 : index
    %c0_181 = arith.constant 0 : index
    %c0_182 = arith.constant 0 : index
    %295 = vector.load %arg5[%c0_179, %c1_180, %c0_181, %c0_182] : memref<1x4x2x128xf32, #tpu.memory_space<vmem>>, vector<1x1x2x128xf32>
    %296 = vector.shape_cast %295 : vector<1x1x2x128xf32> to vector<2x128xf32>
    %c29 = arith.constant 29 : index
    %297 = memref.load %arg3[%c29] : memref<32xf32, #tpu.memory_space<smem>>
    %298 = vector.broadcast %297 : f32 to vector<2x128xf32>
    %299 = arith.mulf %296, %298 : vector<2x128xf32>
    %300 = arith.addf %294, %299 : vector<2x128xf32>
    %c0_183 = arith.constant 0 : index
    %c2_184 = arith.constant 2 : index
    %c0_185 = arith.constant 0 : index
    %c0_186 = arith.constant 0 : index
    %301 = vector.load %arg5[%c0_183, %c2_184, %c0_185, %c0_186] : memref<1x4x2x128xf32, #tpu.memory_space<vmem>>, vector<1x1x2x128xf32>
    %302 = vector.shape_cast %301 : vector<1x1x2x128xf32> to vector<2x128xf32>
    %c30 = arith.constant 30 : index
    %303 = memref.load %arg3[%c30] : memref<32xf32, #tpu.memory_space<smem>>
    %304 = vector.broadcast %303 : f32 to vector<2x128xf32>
    %305 = arith.mulf %302, %304 : vector<2x128xf32>
    %306 = arith.addf %300, %305 : vector<2x128xf32>
    %c0_187 = arith.constant 0 : index
    %c3_188 = arith.constant 3 : index
    %c0_189 = arith.constant 0 : index
    %c0_190 = arith.constant 0 : index
    %307 = vector.load %arg5[%c0_187, %c3_188, %c0_189, %c0_190] : memref<1x4x2x128xf32, #tpu.memory_space<vmem>>, vector<1x1x2x128xf32>
    %308 = vector.shape_cast %307 : vector<1x1x2x128xf32> to vector<2x128xf32>
    %c31 = arith.constant 31 : index
    %309 = memref.load %arg3[%c31] : memref<32xf32, #tpu.memory_space<smem>>
    %310 = vector.broadcast %309 : f32 to vector<2x128xf32>
    %311 = arith.mulf %308, %310 : vector<2x128xf32>
    %312 = arith.addf %306, %311 : vector<2x128xf32>
    %313 = arith.negf %312 : vector<2x128xf32>
    %314 = math.exp %313 : vector<2x128xf32>
    %cst_191 = arith.constant 1.000000e+00 : f32
    %315 = vector.broadcast %cst_191 : f32 to vector<2x128xf32>
    %316 = arith.addf %315, %314 : vector<2x128xf32>
    %317 = arith.divf %315, %316 : vector<2x128xf32>
    %318 = arith.mulf %312, %317 : vector<2x128xf32>
    %319 = arith.mulf %318, %34 : vector<2x128xf32>
    %c0_192 = arith.constant 0 : index
    %c7_193 = arith.constant 7 : index
    %c0_194 = arith.constant 0 : index
    %c0_195 = arith.constant 0 : index
    %320 = vector.load %arg6[%c0_192, %c7_193, %c0_194, %c0_195] : memref<1x8x2x128xf32, #tpu.memory_space<vmem>>, vector<1x1x2x128xf32>
    %321 = vector.shape_cast %320 : vector<1x1x2x128xf32> to vector<2x128xf32>
    %322 = vector.shape_cast %319 : vector<2x128xf32> to vector<1x1x2x128xf32>
    tpu.vector_store %arg6[%c0_192, %c7_193, %c0_194, %c0_195], %322 {strides = array<i32>} : memref<1x8x2x128xf32, #tpu.memory_space<vmem>>, vector<1x1x2x128xf32>,
    return
  }
  func.func @transform_0(%arg0: i32, %arg1: i32) -> i32 {
    %c0_i32 = arith.constant 0 : i32
    %c0_i32_0 = arith.constant 0 : i32
    return %c0_i32 : i32
  }
  func.func @transform_1(%arg0: i32, %arg1: i32) -> i32 {
    %c0_i32 = arith.constant 0 : i32
    %c0_i32_0 = arith.constant 0 : i32
    return %c0_i32 : i32
  }
  func.func @transform_2(%arg0: i32, %arg1: i32) -> i32 {
    %c0_i32 = arith.constant 0 : i32
    %c0_i32_0 = arith.constant 0 : i32
    return %c0_i32 : i32
  }
  func.func @transform_3(%arg0: i32, %arg1: i32) -> (i32, i32, i32, i32) {
    %c0_i32 = arith.constant 0 : i32
    %c0_i32_0 = arith.constant 0 : i32
    %c0_i32_1 = arith.constant 0 : i32
    return %arg0, %c0_i32, %arg1, %c0_i32_0 : i32, i32, i32, i32
  }
  func.func @transform_4(%arg0: i32, %arg1: i32) -> (i32, i32, i32, i32) {
    %c0_i32 = arith.constant 0 : i32
    %c0_i32_0 = arith.constant 0 : i32
    %c0_i32_1 = arith.constant 0 : i32
    return %arg0, %c0_i32, %arg1, %c0_i32_0 : i32, i32, i32, i32
  }
}

</mosaic_0001>

<bundles_post_ra>
// kernel: tpu_custom_call.1
= control target key start
LH: loop header
LB: loop body
LE: loop exit
PB: predicated region body
PF: predicated region fallthrough
CT: control target
= control target key end

     0   :  { %s1566_s0 = inlined_call_operand.hbm [shape: f32[4], index: 0, kind: input, shape index: {}]   ;;  %s1567_s1 = inlined_call_operand.vmem [shape: f32[32], index: 1, kind: input, shape index: {}]   ;;  %s1568_s2 = inlined_call_operand.vmem [shape: f32[8], index: 2, kind: input, shape index: {}]   ;;  %s1569_s3 = inlined_call_operand.hbm [shape: f32[2,4,2,128], index: 3, kind: input, shape index: {}]   ;;  %s1570_s4 = inlined_call_operand.hbm [shape: f32[2,8,2,128], index: 4, kind: output, shape index: {}]  }
   0x1   :  { %1575 = sst [smem:[#allocation17_spill]] %s1566_s0 }
   0x2   :  { %9 = vsyncpa [#allocation5], 0 }
   0x3   :  { %10 = vsyncpa [#allocation6], 0 }
   0x4   :  { %11 = vsyncpa [#allocation9], 0 }
   0x5   :  { %12 = vsyncpa [#allocation3], 0 }
   0x6   :  { %14 = vsyncpa [#allocation3 + $0x1], 0 }
   0x7   :  { %15 = vsyncpa [#allocation4], 0 }
   0x8   :  { %17 = vsyncpa [#allocation4 + $0x1], 0  ;;  %s1136_s15 = smov 0   ;;  %s1138_s16 = smov 0  }
   0x9   :  { %s1140_s17 = smov 0   ;;  %s1142_s18 = smov 0  }
   0xa   :  { %s1144_s19 = smov 0   ;;  %s1146_s20 = smov 0  }
   0xb LB: > { %s692_s21 = sadd.s32 4294967295, %s1100_s20   ;;  %s693_s22 = sadd.s32 4294967294, %s1100_s20   ;;  %s1100_s20 = sphi %s1146_s20, %s23_s20   ;;  %s1096_s19 = sphi %s1144_s19, %s1595_s19   ;;  %s1092_s18 = sphi %s1142_s18, %s1594_s18   ;;  %s1088_s17 = sphi %s1140_s17, %s1593_s17   ;;  %s1084_s16 = sphi %s1138_s16, %s1592_s16   ;;  %s1080_s15 = sphi %s1136_s15, %s1591_s15  }
   0xc   : > { %p120_p0 = scmp.ne.s32.totalorder %s1084_s16, %s1080_s15  ;;  %p1170_p1 = scmp.eq.s32.totalorder %s692_s21, 0 }
   0xd   : > { %p1174_p2 = scmp.eq.s32.totalorder %s692_s21, 1  ;;  %p152_p3 = scmp.eq.s32.totalorder %s693_s22, 1 }
   0xe   : > { %s1576_s23 = scalar_select %p1170_p1, 1, 0 }
   0xf   : > { %p1180_p4 = por %p1170_p1, %p120_p0  ;;  %p694_p5 = scmp.ge.s32.totalorder %s1100_s20, 1 }
  0x10   : > { %p1185_p6 = por %p152_p3, %p120_p0  ;;  %p159_p7 = scmp.lt.s32.totalorder %s1100_s20, 3 }
  0x11   : > { %s1578_s25 = scalar_select %p1180_p4, 1, 0 }
  0x12   : > { %s1579_s26 = scalar_select %p1185_p6, 1, 0 }
  0x13   : > { %p1190_p8 = pnand %p694_p5, %p159_p7  ;;  %s181_s30 = sshll.u32 %s1567_s1, 4  ;;  %s182_s30 = int_to_ptr.vmem [resolvable:$true] %s181_s30 }
  0x14   : > { %s192_s7 = sshll.u32 %s1568_s2, 4  ;;  %s1582_s0 = sld [smem:[#allocation17_spill]]  ;;  %s1209_s7 = int_to_ptr.vmem [resolvable:$true] %s192_s7 }
  0x15   : > { %p812_p10 = pneg %p1190_p8 }
  0x17   : > { %p1205_p11 = pnand %p812_p10, %p1170_p1 }
  0x19   : > { %p935_p13 = pneg %p1205_p11 }
  0x1a   : > { %s933_s11 = scalar_lea.hbm %s1582_s0, 16 }
  0x1b   : > { %p934_p12 = scmp.ne.s32.totalorder %s1582_s0, %s933_s11  ;;  %p940_p5 = scmp.lt.u32.totalorder %s933_s11, %s1582_s0 }
  0x1d   : > { %p936_p0 = pnand %p935_p13, %p934_p12 }
  0x1f   : > { %p937_p3 = pneg %p936_p0 }
  0x21   : > { %p942_p7 = pnand %p940_p5, %p937_p3 }
  0x23   : > { %945 = shalt.err (!%p942_p7)
}
  0x24   : > { %s1102_s22 = smov [#allocation2]   ;;  %s946_s5 = scalar_lea.vmem %s182_s30, 16 }
  0x25   : > { %815 = dma.hbm_to_smem (!%p1205_p11), %s1582_s0, 16, %s1102_s22, [#allocation5]  }
  0x26   : > { %p947_p10 = scmp.ne.s32.totalorder %s182_s30, %s946_s5  ;;  %p954_p9 = scmp.lt.s32.totalorder %s182_s30, %s182_s30 }
  0x27   : > { %p955_p6 = scmp.lt.s32.totalorder %s946_s5, %s946_s5 }
  0x28   : > { %p949_p12 = pnand %p947_p10, %p935_p13 }
  0x29   : > { %p956_p4 = por %p955_p6, %p954_p9 }
  0x2a   : > { %p950_p0 = pneg %p949_p12 }
  0x2c   : > { %p957_p1 = pnand %p956_p4, %p950_p0 }
  0x2e   : > { %960 = shalt.err (!%p957_p1)
}
  0x2f   : > { %s1103_s6 = smov [#allocation7]   ;;  %s961_s9 = scalar_lea.vmem %s1209_s7, 16 }
  0x30   : > { %818 = dma.vmem_to_smem (!%p1205_p11), %s182_s30, 16, %s1103_s6, [#allocation6]  }
  0x31   : > { %p962_p3 = scmp.ne.s32.totalorder %s1209_s7, %s961_s9  ;;  %p969_p10 = scmp.lt.s32.totalorder %s1209_s7, %s1209_s7 }
  0x32   : > { %p970_p12 = scmp.lt.s32.totalorder %s961_s9, %s961_s9 }
  0x33   : > { %p964_p5 = pnand %p962_p3, %p935_p13 }
  0x34   : > { %p971_p6 = por %p970_p12, %p969_p10 }
  0x35   : > { %p965_p7 = pneg %p964_p5 }
  0x37   : > { %p972_p4 = pnand %p971_p6, %p965_p7 }
  0x39   : > { %975 = shalt.err (!%p972_p4)
}
  0x3a   : > { %s1104_s10 = smov [#allocation8]   ;;  %s35_s30 = sadd.s32 1, %s1096_s19 }
  0x3b   : > { %821 = dma.vmem_to_smem (!%p1205_p11), %s1209_s7, 16, %s1104_s10, [#allocation9]  }
  0x3c   : > { %p37_p1 = scmp.ge.s32.totalorder %s35_s30, 2  ;;  %s107_s11 = sadd.s32 1, %s1088_s17 }
  0x3d   : > { %p114_p9 = scmp.ne.s32.totalorder %s1088_s17, %s1084_s16  ;;  %p115_p13 = scmp.eq.s32.totalorder %s1100_s20, 0 }
  0x3e   : > { %s1597_s30 = smov (%p37_p1, %s35_s30), 0  ;;  %p833_p11 = scmp.lt.s32.totalorder %s1100_s20, 2 }
  0x3f   : > { %p1252_p0 = por %p115_p13, %p114_p9  ;;  %p1258_p3 = por %p1174_p2, %p114_p9 }
  0x40   : > { %s102_s13 = ssub.s32 %s1096_s19, %s1597_s30  ;;  %s203_s7 = sand.u32 1, %s1088_s17  }
  0x41   : > { %s1584_s12 = scalar_select %p1258_p3, 1, 0 }
  0x42   : > { %p105_p5 = scmp.eq.s32.totalorder %s102_s13, 0  ;;  %s699_s14 = sshll.u32 %s203_s7, 3 }
  0x43   : > { %s794_s22 = sshll.u32 %s1096_s19, 7  ;;  %s207_s24 = scalar_lea.vmem [#allocation10], %s699_s14 }
  0x44   : > { %s1267_s21 = scalar_select %p105_p5, %s1088_s17, %s107_s11  }
  0x45   : > { %s1273_s5 = scalar_lea.hbm %s1569_s3, %s794_s22  ;;  %s215_s6 = sshll.u32 %s207_s24, 4  ;;  %s1275_s6 = int_to_ptr.vmem [resolvable:$true] %s215_s6 }
  0x46   : > { %p1279_p2 = pnand %p833_p11, %p1252_p0  ;;  %s1283_s10 = scalar_lea.sflag [#allocation3], %s203_s7 }
  0x47   : > { %s976_s11 = scalar_lea.hbm %s1273_s5, 128  ;;  %s981_s8 = scalar_lea.hbm %s1569_s3, 256 }
  0x48   : > { %p977_p7 = scmp.ne.s32.totalorder %s1273_s5, %s976_s11  ;;  %p978_p10 = pneg %p1279_p2 }
  0x49   : > { %p982_p4 = scmp.lt.u32.totalorder %s1273_s5, %s1569_s3  ;;  %p983_p1 = scmp.lt.u32.totalorder %s981_s8, %s976_s11 }
  0x4a   : > { %p979_p12 = pnand %p978_p10, %p977_p7  ;;  %p985_p13 = scmp.lt.u32.totalorder %s976_s11, %s1273_s5 }
  0x4b   : > { %p984_p9 = por %p983_p1, %p982_p4 }
  0x4c   : > { %p980_p6 = pneg %p979_p12 }
  0x4d   : > { %p986_p0 = por %p985_p13, %p984_p9 }
  0x4f   : > { %p987_p11 = pnand %p986_p0, %p980_p6 }
  0x51   : > { %990 = shalt.err (!%p987_p11)
}
  0x52   : > { %s991_s7 = scalar_lea.vmem %s1275_s6, 128  ;;  %s1105_s29 = smov [#allocation10]  }
  0x53   : > { %p992_p5 = scmp.ne.s32.totalorder %s1275_s6, %s991_s7  ;;  %s996_s24 = sshll.u32 %s1105_s29, 4  ;;  %s997_s24 = int_to_ptr.vmem [resolvable:$false] %s996_s24 }
  0x54   : > { %s998_s13 = scalar_lea.vmem %s997_s24, 256  ;;  %p999_p3 = scmp.lt.s32.totalorder %s1275_s6, %s997_s24 }
  0x55   : > { %p994_p7 = pnand %p992_p5, %p978_p10  ;;  %p1000_p4 = scmp.lt.s32.totalorder %s998_s13, %s991_s7 }
  0x57   : > { %p995_p12 = pneg %p994_p7  ;;  %p1001_p1 = por %p1000_p4, %p999_p3 }
  0x59   : > { %p1002_p9 = pnand %p1001_p1, %p995_p12 }
  0x5b   : > { %1005 = shalt.err (!%p1002_p9)
}
  0x5c   : > { %s1106_s11 = smov 32   ;;  %s1107_s14 = smov 2  }
  0x5d   : > { %825 = dma.hbm_to_vmem [thread:$0]  (!%p1279_p2), %s1273_s5, 128, %s1275_s6, %s1283_s10, %s1106_s11, %s1106_s11, %s1107_s14  }
  0x5e   : > { %227 = sbr.rel (%p1190_p8) target bundleno = 205 (0xcd), region = 36  ;;  %p1586_p10 = scmp.ne.s32.totalorder (!%p1190_p8), %s1576_s23, 0 }
  0x65   : > { %1059 = dma.done.wait (%p1586_p10), [#allocation5], 16  }
  0x66   : > { %1061 = vsyncadd (%p1586_p10), [#allocation5], 4294967280 }
  0x67   : > { %1063 = dma.done.wait (%p1586_p10), [#allocation6], 16  }
  0x68   : > { %1065 = vsyncadd (%p1586_p10), [#allocation6], 4294967280 }
  0x69   : > { %1067 = dma.done.wait (%p1586_p10), [#allocation9], 16  }
  0x6a   : > { %1069 = vsyncadd (%p1586_p10), [#allocation9], 4294967280  ;;  %s1326_s27 = sand.u32 1, %s1084_s16   ;;  %p1587_p8 = scmp.ne.s32.totalorder %s1578_s25, 0 }
  0x6b   : > { %s706_s5 = sshll.u32 %s1326_s27, 3  ;;  %s242_s6 = scalar_lea.sflag [#allocation3], %s1326_s27 }
  0x6c   : > { %s1330_s9 = scalar_lea.vmem [#allocation10], %s706_s5 }
  0x6d   : > { %1071 = dma.done.wait (%p1587_p8), %s242_s6, 128  }
  0x6e   : > { %1073 = vsyncadd (%p1587_p8), %s242_s6, 4294967168 }
  0x6f   : > { %250 = sfence }
  0x70   : > { %v271_v0 = vld [vmem:[%s1330_s9] sm:$0x3]  ;;  %v708_v1 = vld [vmem:[%s1330_s9 + $0x2] sm:$0x3]  ;;  %v709_v4 = vld [vmem:[%s1330_s9 + $0x4] sm:$0x3] }
  0x71   : > { %v274_v2 = vmax.f32 %v271_v0, %v708_v1  ;;  %v275_v3 = vadd.f32 %v708_v1, %v271_v0  ;;  %v710_v5 = vld [vmem:[%s1330_s9 + $0x6] sm:$0x3]  ;;  %s284_s23 = sld [smem:[#allocation2]]  ;;  %s711_s10 = sld [smem:[#allocation2 + $0x1]]  ;;  %v334_v19 = vld [vmem:[%s1330_s9] sm:$0x3] }
  0x72   : > { %s1340_s8 = sld [smem:[#allocation2 + $0x2]]  ;;  %s307_s22 = sld [smem:[#allocation7]]  ;;  %v721_v24 = vld [vmem:[%s1330_s9 + $0x2] sm:$0x3]  ;;  %v723_v28 = vld [vmem:[%s1330_s9 + $0x4] sm:$0x3] }
  0x73   : > { %v278_v6 = vmax.f32 %v274_v2, %v709_v4  ;;  %v279_v7 = vadd.f32 %v709_v4, %v275_v3  ;;  %s1342_s25 = sld [smem:[#allocation8]]  ;;  %s715_s28 = sld [smem:[#allocation7 + $0x1]]  ;;  %v725_v32 = vld [vmem:[%s1330_s9 + $0x6] sm:$0x3]  ;;  %v366_v37 = vld [vmem:[%s1330_s9] sm:$0x3] }
  0x74   : > { %s716_s7 = sld [smem:[#allocation7 + $0x2]]  ;;  %s1344_s29 = sld [smem:[#allocation7 + $0x3]]  ;;  %v731_v42 = vld [vmem:[%s1330_s9 + $0x2] sm:$0x3]  ;;  %v733_v47 = vld [vmem:[%s1330_s9 + $0x4] sm:$0x3] }
  0x75   : > { %v282_v8 = vmax.f32 %v278_v6, %v710_v5  ;;  %v283_v9 = vadd.f32 %v710_v5, %v279_v7  ;;  %s1346_s24 = sld [smem:[#allocation7 + $0x4]]  ;;  %s1348_s13 = sld [smem:[#allocation8 + $0x1]]  ;;  %v735_v51 = vld [vmem:[%s1330_s9 + $0x6] sm:$0x3]  ;;  %v398_v56 = vld [vmem:[%s1330_s9] sm:$0x3] }
  0x76   : > { %s1350_s11 = sld [smem:[#allocation7 + $0x5]]  ;;  %s1352_s14 = sld [smem:[#allocation7 + $0x6]]  ;;  %v741_v61 = vld [vmem:[%s1330_s9 + $0x2] sm:$0x3]  ;;  %v743_v2 = vld [vmem:[%s1330_s9 + $0x4] sm:$0x3] }
  0x77   : > { %v285_v10 = vstv %s284_s23  ;;  %v288_v11 = vstv %s711_s10  ;;  %s1354_s5 = sld [smem:[#allocation7 + $0x7]]  ;;  %s1356_s6 = sld [smem:[#allocation7 + $0x8]]  ;;  %v745_v7 = vld [vmem:[%s1330_s9 + $0x6] sm:$0x3] }
  0x78   : > { %v286_v12 = vmul.f32 %v285_v10, %v282_v8  ;;  %v289_v13 = vmul.f32 %v288_v11, %v283_v9  ;;  %v308_v14 = vstv %s307_s22  ;;  %v292_v15 = vstv %s1340_s8  ;;  %s1361_s23 = sld [smem:[#allocation8 + $0x2]]  ;;  %s1363_s10 = sld [smem:[#allocation7 + $0x9]]  ;;  %v430_v11 = vld [vmem:[%s1330_s9] sm:$0x3] }
  0x79   : > { %v309_v16 = vmul.f32 %v308_v14, %v271_v0  ;;  %v311_v17 = vstv %s1342_s25  ;;  %v314_v18 = vstv %s715_s28  ;;  %s1367_s22 = sld [smem:[#allocation7 + $0xa]]  ;;  %s1369_s8 = sld [smem:[#allocation7 + $0xb]] }
  0x7a   : > { %v290_v20 = vadd.f32 %v289_v13, %v286_v12  ;;  %v315_v21 = vmul.f32 %v708_v1, %v314_v18  ;;  %v318_v22 = vstv %s716_s7  ;;  %v322_v23 = vstv %s1344_s29  ;;  %s1373_s25 = sld [smem:[#allocation7 + $0xc]]  ;;  %s1375_s28 = sld [smem:[#allocation8 + $0x3]] }
  0x7b   : > { %v312_v25 = vadd.f32 %v311_v17, %v309_v16  ;;  %v319_v26 = vmul.f32 %v709_v4, %v318_v22  ;;  %v336_v27 = vstv %s1346_s24  ;;  %v339_v31 = vstv %s1348_s13  ;;  %s1381_s7 = sld [smem:[#allocation7 + $0xd]]  ;;  %s1386_s29 = sld [smem:[#allocation7 + $0xe]]  ;;  %v751_v16 = vld [vmem:[%s1330_s9 + $0x2] sm:$0x3] }
  0x7c   : > { %v1377_v29 = vadd.f32 %v292_v15, %v290_v20  ;;  %v337_v30 = vmul.f32 %v336_v27, %v334_v19  ;;  %v323_v34 = vmul.f32 %v710_v5, %v322_v23  ;;  %v343_v35 = vstv %s1350_s11  ;;  %s1388_s24 = sld [smem:[#allocation7 + $0xf]]  ;;  %s1392_s13 = sld [smem:[#allocation7 + $0x10]] }
  0x7d   : > { %v316_v33 = vadd.f32 %v315_v21, %v312_v25  ;;  %v348_v36 = vstv %s1352_s14  ;;  %v344_v40 = vmul.f32 %v721_v24, %v343_v35  ;;  %v353_v44 = vstv %s1354_s5  ;;  %s1398_s11 = sld [smem:[#allocation8 + $0x4]]  ;;  %s1400_s14 = sld [smem:[#allocation7 + $0x11]]  ;;  %v753_v21 = vld [vmem:[%s1330_s9 + $0x4] sm:$0x3]  ;;  %v755_v25 = vld [vmem:[%s1330_s9 + $0x6] sm:$0x3] }
  0x7e   : > { %v713_v38 = vmul.f32 -1.442695, %v1377_v29  ;;  %v340_v39 = vadd.f32 %v339_v31, %v337_v30  ;;  %v349_v41 = vmul.f32 %v723_v28, %v348_v36  ;;  %v368_v45 = vstv %s1356_s6  ;;  %s1403_s0 = sld [smem:[#allocation7 + $0x12]]  ;;  %s1411_s5 = sld [smem:[#allocation7 + $0x13]] }
  0x7f   : > { %v320_v43 = vadd.f32 %v319_v26, %v316_v33  ;;  %v371_v46 = vstv %s1361_s23  ;;  %v354_v49 = vmul.f32 %v725_v32, %v353_v44  ;;  %v369_v50 = vmul.f32 %v368_v45, %v366_v37  ;;  %s1413_s6 = sld [smem:[#allocation7 + $0x14]]  ;;  %s1420_s23 = sld [smem:[#allocation8 + $0x5]]  ;;  %v462_v26 = vld [vmem:[%s1330_s9] sm:$0x3]  ;;  %v761_v37 = vld [vmem:[%s1330_s9 + $0x2] sm:$0x3] }
  0x80   : > { %893 = vpow2.f32 %v713_v38  ;;  %v345_v48 = vadd.f32 %v344_v40, %v340_v39  ;;  %v375_v53 = vstv %s1363_s10  ;;  %v380_v54 = vstv %s1367_s22  ;;  %s1426_s10 = sld [smem:[#allocation7 + $0x15]]  ;;  %s1431_s22 = sld [smem:[#allocation7 + $0x16]] }
  0x81   : > { %v1405_v52 = vadd.f32 %v323_v34, %v320_v43  ;;  %v385_v55 = vstv %s1369_s8  ;;  %v372_v58 = vadd.f32 %v371_v46, %v369_v50  ;;  %v376_v59 = vmul.f32 %v731_v42, %v375_v53  ;;  %s1435_s8 = sld [smem:[#allocation7 + $0x17]]  ;;  %v763_v42 = vld [vmem:[%s1330_s9 + $0x4] sm:$0x3]  ;;  %v765_v46 = vld [vmem:[%s1330_s9 + $0x6] sm:$0x3]  ;;  %p1588_p2 = scmp.ne.s32.totalorder %s1584_s12, 0 }
  0x82   : > { %v350_v57 = vadd.f32 %v349_v41, %v345_v48  ;;  %v381_v60 = vmul.f32 %v733_v47, %v380_v54  ;;  %v386_v63 = vmul.f32 %v735_v51, %v385_v55  ;;  %v400_v0 = vstv %s1373_s25  ;;  %s1441_s25 = sld [smem:[#allocation7 + $0x18]]  ;;  %v494_v50 = vld [vmem:[%s1330_s9] sm:$0x3] }
  0x83   : > { %v718_v62 = vmul.f32 -1.442695, %v1405_v52  ;;  %v403_v1 = vstv %s1375_s28  ;;  %v377_v4 = vadd.f32 %v376_v59, %v372_v58  ;;  %v401_v5 = vmul.f32 %v400_v0, %v398_v56  ;;  %s1443_s28 = sld [smem:[#allocation8 + $0x6]]  ;;  %v773_v0 = vld [vmem:[%s1330_s9 + $0x4] sm:$0x3] }
  0x84   : > { %v1422_v3 = vadd.f32 %v354_v49, %v350_v57  ;;  %v407_v6 = vstv %s1381_s7  ;;  %v412_v9 = vstv %s1386_s29  ;;  %v417_v10 = vstv %s1388_s24  ;;  %s1449_s7 = sld [smem:[#allocation7 + $0x19]]  ;;  %s1454_s29 = sld [smem:[#allocation7 + $0x1a]] }
  0x85   : > { %895 = vpow2.f32 %v718_v62  ;;  %v408_v8 = vmul.f32 %v741_v61, %v407_v6  ;;  %v382_v13 = vadd.f32 %v381_v60, %v377_v4  ;;  %v404_v14 = vadd.f32 %v403_v1, %v401_v5  ;;  %s1456_s24 = sld [smem:[#allocation7 + $0x1b]]  ;;  %v771_v61 = vld [vmem:[%s1330_s9 + $0x2] sm:$0x3]  ;;  %v775_v1 = vld [vmem:[%s1330_s9 + $0x6] sm:$0x3] }
  0x86   : > { %v727_v12 = vmul.f32 -1.442695, %v1422_v3  ;;  %v413_v15 = vmul.f32 %v743_v2, %v412_v9  ;;  %v418_v17 = vmul.f32 %v745_v7, %v417_v10  ;;  %v432_v18 = vstv %s1392_s13  ;;  %s1468_s13 = sld [smem:[#allocation8 + $0x7]] }
  0x87   : > { %v435_v19 = vstv %s1398_s11  ;;  %v439_v20 = vstv %s1400_s14  ;;  %v1445_v22 = vadd.f32 %v386_v63, %v382_v13  ;;  %v409_v23 = vadd.f32 %v408_v8, %v404_v14  ;;  %s1472_s11 = sld [smem:[#allocation7 + $0x1d]]  ;;  %s1476_s14 = sld [smem:[#allocation7 + $0x1e]] }
  0x88   : > { %897 = vpow2.f32 %v727_v12  ;;  %v433_v24 = vmul.f32 %v432_v18, %v430_v11  ;;  %v440_v27 = vmul.f32 %v751_v16, %v439_v20  ;;  %v444_v28 = vstv %s1403_s0  ;;  %s1466_s0 = sld [smem:[#allocation7 + $0x1c]]  ;;  %v526_v11 = vld [vmem:[%s1330_s9] sm:$0x3] }
  0x89   : > { %v449_v30 = vstv %s1411_s5  ;;  %v464_v31 = vstv %s1413_s6  ;;  %v737_v33 = vmul.f32 -1.442695, %v1445_v22  ;;  %v414_v34 = vadd.f32 %v413_v15, %v409_v23  ;;  %s1478_s5 = sld [smem:[#allocation7 + $0x1f]]  ;;  %v781_v15 = vld [vmem:[%s1330_s9 + $0x2] sm:$0x3] }
  0x8a   : > { %v894_v32 = vpop.eup %893  ;;  %v436_v35 = vadd.f32 %v435_v19, %v433_v24  ;;  %v445_v36 = vmul.f32 %v753_v21, %v444_v28  ;;  %v450_v39 = vmul.f32 %v755_v25, %v449_v30  ;;  %v465_v40 = vmul.f32 %v464_v31, %v462_v26  ;;  %v783_v19 = vld [vmem:[%s1330_s9 + $0x4] sm:$0x3]  ;;  %v785_v28 = vld [vmem:[%s1330_s9 + $0x6] sm:$0x3]  ;;  %s707_s9 = sshll.u32 %s1326_s27, 4 }
  0x8b   : > { %v297_v38 = vadd.f32 1.0, %v894_v32  ;;  %v467_v41 = vstv %s1420_s23  ;;  %899 = vpow2.f32 %v737_v33  ;;  %v1462_v43 = vadd.f32 %v418_v17, %v414_v34  ;;  %s270_s6 = scalar_lea.vmem [#allocation11], %s707_s9 }
  0x8c   : > { %v441_v44 = vadd.f32 %v440_v27, %v436_v35  ;;  %v471_v45 = vstv %s1426_s10  ;;  %v468_v47 = vadd.f32 %v467_v41, %v465_v40  ;;  %v476_v49 = vstv %s1431_s22  ;;  %s573_s23 = sshll.u32 %s270_s6, 4  ;;  %s795_s10 = sshll.u32 %s1092_s18, 8  ;;  %s1512_s23 = int_to_ptr.vmem [resolvable:$true] %s573_s23 }
  0x8d   : > { %901 = vrcp.f32 %v297_v38  ;;  %v472_v48 = vmul.f32 %v761_v37, %v471_v45  ;;  %v747_v51 = vmul.f32 -1.442695, %v1462_v43  ;;  %v477_v54 = vmul.f32 %v763_v42, %v476_v49  ;;  %s1108_s18 = smov [#allocation11]  }
  0x8e   : > { %v446_v53 = vadd.f32 %v445_v36, %v441_v44  ;;  %v481_v55 = vstv %s1435_s8  ;;  %v496_v59 = vstv %s1441_s25  ;;  %v499_v60 = vstv %s1443_s28  ;;  %s1517_s25 = scalar_lea.hbm %s1570_s4, %s795_s10  ;;  %s559_s28 = scalar_lea.sflag [#allocation4], %s1326_s27 }
  0x8f   : > { %v896_v56 = vpop.eup %895  ;;  %v473_v57 = vadd.f32 %v472_v48, %v468_v47  ;;  %v482_v58 = vmul.f32 %v765_v46, %v481_v55  ;;  %903 = vpow2.f32 %v747_v51  ;;  %v497_v63 = vmul.f32 %v496_v59, %v494_v50 }
  0x90   : > { %v1483_v62 = vadd.f32 %v450_v39, %v446_v53  ;;  %v503_v4 = vstv %s1449_s7  ;;  %v508_v5 = vstv %s1454_s29  ;;  %v513_v6 = vstv %s1456_s24  ;;  %s1006_s7 = scalar_lea.vmem %s1512_s23, 256  ;;  %s1010_s29 = sshll.u32 %s1108_s18, 4  ;;  %s1011_s29 = int_to_ptr.vmem [resolvable:$false] %s1010_s29 }
  0x91   : > { %v478_v2 = vadd.f32 %v477_v54, %v473_v57  ;;  %v500_v9 = vadd.f32 %v499_v60, %v497_v63  ;;  %v504_v10 = vmul.f32 %v771_v61, %v503_v4  ;;  %v509_v13 = vmul.f32 %v773_v0, %v508_v5  ;;  %p1007_p3 = scmp.ne.s32.totalorder %s1512_s23, %s1006_s7  ;;  %s1012_s24 = scalar_lea.vmem %s1011_s29, 512 }
  0x92   : > { %v898_v7 = vpop.eup %897  ;;  %v757_v8 = vmul.f32 -1.442695, %v1483_v62  ;;  %v514_v14 = vmul.f32 %v775_v1, %v513_v6  ;;  %v528_v17 = vstv %s1466_s0  ;;  %v531_v18 = vstv %s1468_s13  ;;  %p1013_p0 = scmp.lt.s32.totalorder %s1512_s23, %s1011_s29  ;;  %p1014_p11 = scmp.lt.s32.totalorder %s1012_s24, %s1006_s7 }
  0x93   : > { %v1492_v12 = vadd.f32 %v482_v58, %v478_v2  ;;  %v505_v16 = vadd.f32 %v504_v10, %v500_v9  ;;  %v529_v21 = vmul.f32 %v528_v17, %v526_v11  ;;  %v535_v23 = vstv %s1472_s11  ;;  %p1008_p6 = pnand %p1007_p3, %p1588_p2 }
  0x94   : > { %905 = vpow2.f32 %v757_v8  ;;  %v536_v26 = vmul.f32 %v781_v15, %v535_v23  ;;  %v540_v27 = vstv %s1476_s14  ;;  %v545_v30 = vstv %s1478_s5  ;;  %p1015_p5 = por %p1014_p11, %p1013_p0 }
  0x95   : > { %v767_v20 = vmul.f32 -1.442695, %v1492_v12  ;;  %v900_v24 = vpop.eup %899  ;;  %v510_v25 = vadd.f32 %v509_v13, %v505_v16  ;;  %v532_v32 = vadd.f32 %v531_v18, %v529_v21  ;;  %v541_v33 = vmul.f32 %v783_v19, %v540_v27  ;;  %p1009_p13 = pneg %p1008_p6 }
  0x96   : > { %v328_v36 = vadd.f32 1.0, %v896_v56  ;;  %v546_v38 = vmul.f32 %v785_v28, %v545_v30  ;;  %v359_v42 = vadd.f32 1.0, %v898_v7  ;;  %v391_v45 = vadd.f32 1.0, %v900_v24 }
  0x97   : > { %v902_v31 = vpop.eup %901  ;;  %907 = vpow2.f32 %v767_v20  ;;  %v515_v35 = vadd.f32 %v514_v14, %v510_v25  ;;  %v537_v37 = vadd.f32 %v536_v26, %v532_v32  ;;  %p1016_p7 = pnand %p1015_p5, %p1009_p13 }
  0x98   : > { %v300_v34 = vmul.f32 %v902_v31, %v1377_v29 }
  0x99   : > { %v904_v39 = vpop.eup %903  ;;  %v777_v41 = vmul.f32 -1.442695, %v515_v35  ;;  %v542_v44 = vadd.f32 %v541_v33, %v537_v37 }
  0x9a   : > { %v714_v40 = vmul.f32 -1.442695, %v300_v34  ;;  %v423_v46 = vadd.f32 1.0, %v904_v39 }
  0x9b   : > { %v547_v47 = vadd.f32 %v546_v38, %v542_v44 }
  0x9c   : > { %909 = vpow2.f32 %v714_v40 }
  0x9d   : > { %911 = vrcp.f32 %v328_v36  ;;  %v787_v50 = vmul.f32 -1.442695, %v547_v47 }
  0x9e   : > { %v906_v48 = vpop.eup %905  ;;  %913 = vpow2.f32 %v777_v41 }
  0x9f   : > { %915 = vrcp.f32 %v359_v42  ;;  %v455_v49 = vadd.f32 1.0, %v906_v48 }
  0xa0   : > { %917 = vrcp.f32 %v391_v45 }
  0xa1   : > { %v908_v29 = vpop.eup %907  ;;  %919 = vrcp.f32 %v423_v46 }
  0xa2   : > { %v487_v51 = vadd.f32 1.0, %v908_v29  ;;  %921 = vpow2.f32 %v787_v50 }
  0xa3   : > { %923 = vrcp.f32 %v455_v49 }
  0xa4   : > { %925 = vrcp.f32 %v487_v51 }
  0xa6   : > { %v910_v53 = vpop.eup %909 }
  0xa7   : > { %v912_v54 = vpop.eup %911  ;;  %v304_v55 = vadd.f32 1.0, %v910_v53 }
  0xa8   : > { %v914_v56 = vpop.eup %913  ;;  %v331_v2 = vmul.f32 %v912_v54, %v1405_v52 }
  0xa9   : > { %v916_v57 = vpop.eup %915  ;;  %927 = vrcp.f32 %v304_v55  ;;  %v519_v58 = vadd.f32 1.0, %v914_v56 }
  0xaa   : > { %v918_v59 = vpop.eup %917  ;;  %v362_v4 = vmul.f32 %v916_v57, %v1422_v3 }
  0xab   : > { %v920_v60 = vpop.eup %919  ;;  %929 = vrcp.f32 %v519_v58  ;;  %v394_v5 = vmul.f32 %v918_v59, %v1445_v22 }
  0xac   : > { %v922_v61 = vpop.eup %921  ;;  %v426_v6 = vmul.f32 %v920_v60, %v1462_v43 }
  0xad   : > { %v924_v63 = vpop.eup %923  ;;  %v551_v0 = vadd.f32 1.0, %v922_v61 }
  0xae   : > { %v926_v1 = vpop.eup %925  ;;  %v458_v7 = vmul.f32 %v924_v63, %v1483_v62 }
  0xaf   : > { %931 = vrcp.f32 %v551_v0  ;;  %v490_v8 = vmul.f32 %v926_v1, %v1492_v12 }
  0xb3   : > { %v928_v9 = vpop.eup %927 }
  0xb4   : > { %v332_v10 = vmul.f32 %v928_v9, %v331_v2  ;;  %v363_v11 = vmul.f32 %v928_v9, %v362_v4  ;;  %v395_v13 = vmul.f32 %v928_v9, %v394_v5  ;;  %v427_v14 = vmul.f32 %v928_v9, %v426_v6 }
  0xb5   : > { %v930_v15 = vpop.eup %929  ;;  %v459_v16 = vmul.f32 %v928_v9, %v458_v7  ;;  %v491_v17 = vmul.f32 %v928_v9, %v490_v8 }
  0xb6   : > { %333 = vst [vmem:[%s270_s6] sm:$0x3] %v332_v10  ;;  %728 = vst [vmem:[%s270_s6 + $0x2] sm:$0x3] %v363_v11  ;;  %v522_v52 = vmul.f32 %v930_v15, %v515_v35 }
  0xb7   : > { %738 = vst [vmem:[%s270_s6 + $0x4] sm:$0x3] %v395_v13  ;;  %748 = vst [vmem:[%s270_s6 + $0x6] sm:$0x3] %v427_v14 }
  0xb8   : > { %758 = vst [vmem:[%s270_s6 + $0x8] sm:$0x3] %v459_v16  ;;  %768 = vst [vmem:[%s270_s6 + $0xa] sm:$0x3] %v491_v17  ;;  %v523_v3 = vmul.f32 %v928_v9, %v522_v52 }
  0xb9   : > { %v932_v22 = vpop.eup %931 }
  0xba   : > { %778 = vst [vmem:[%s270_s6 + $0xc] sm:$0x3] %v523_v3  ;;  %v554_v43 = vmul.f32 %v932_v22, %v547_v47 }
  0xbc   : > { %v555_v62 = vmul.f32 %v928_v9, %v554_v43 }
  0xbe   : > { %788 = vst [vmem:[%s270_s6 + $0xe] sm:$0x3] %v555_v62 }
  0xbf   : > { %1019 = shalt.err (!%p1016_p7)
}
  0xc0   : > { %s1020_s0 = scalar_lea.hbm %s1517_s25, 256  ;;  %s1024_s14 = scalar_lea.hbm %s1570_s4, 512 }
  0xc1   : > { %p1021_p12 = scmp.ne.s32.totalorder %s1517_s25, %s1020_s0  ;;  %p1025_p9 = scmp.lt.u32.totalorder %s1517_s25, %s1570_s4 }
  0xc2   : > { %p1026_p10 = scmp.lt.u32.totalorder %s1024_s14, %s1020_s0  ;;  %p1028_p3 = scmp.lt.u32.totalorder %s1020_s0, %s1517_s25 }
  0xc3   : > { %p1022_p4 = pnand %p1021_p12, %p1588_p2 }
  0xc4   : > { %p1027_p8 = por %p1026_p10, %p1025_p9 }
  0xc5   : > { %p1023_p1 = pneg %p1022_p4 }
  0xc6   : > { %p1029_p6 = por %p1028_p3, %p1027_p8 }
  0xc8   : > { %p1030_p13 = pnand %p1029_p6, %p1023_p1 }
  0xca   : > { %1033 = shalt.err (!%p1030_p13)
}
  0xcb   : > { %s1109_s6 = smov 32   ;;  %s1110_s10 = smov 2  }
  0xcc   : > { %810 = dma.vmem_to_hbm [thread:$0]  (%p1588_p2), %s1512_s23, 256, %s1517_s25, %s559_s28, %s1109_s6, %s1109_s6, %s1110_s10  }
  0xcd PF: > { %s588_s22 = sand.u32 1, %s1080_s15   ;;  %p1589_p0 = scmp.ne.s32.totalorder %s1579_s26, 0 }
  0xce   : > { %p1590_p11 = scmp.ge.s32.totalorder %s1100_s20, 2  ;;  %s589_s8 = scalar_lea.sflag [#allocation4], %s588_s22 }
  0xd0   : > { %p827_p5 = pnand %p1590_p11, %p1589_p0 }
  0xd2   : > { %1075 = dma.done.wait (!%p827_p5), %s589_s8, 256  }
  0xd3   : > { %1077 = vsyncadd (!%p827_p5), %s589_s8, 4294967040  ;;  %s23_s20 = sadd.s32 1, %s1100_s20   ;;  %s1591_s15 = smov %s1084_s16 }
  0xd4   : > { %p20_p7 = scmp.ge.s32.totalorder %s23_s20, 4   ;;  %s1592_s16 = smov %s1088_s17 }
  0xd5   : > { %s1593_s17 = smov %s1267_s21  ;;  %s1594_s18 = smov %s1096_s19 }
  0xd6   : > { %s1595_s19 = smov %s1597_s30  ;;  %22 = sbr.rel (!%p20_p7) target bundleno = 11 (0xb), region = 105 }
  0xdd   :  { %594 = vsyncpa [#allocation3], 1 }
  0xde   :  { %596 = vsyncpa [#allocation3 + $0x1], 1 }
  0xdf   :  { %597 = vsyncpa [#allocation4], 1 }
  0xe0   :  { %599 = vsyncpa [#allocation4 + $0x1], 1 }
  0xe1   :  { %600 = vsyncpa [#allocation5], 1 }
  0xe2   :  { %602 = vsyncpa [#allocation5 + $0x1], 1 }
  0xe3   :  { %603 = vsyncpa [#allocation6], 1 }
  0xe4   :  { %605 = vsyncpa [#allocation6 + $0x1], 1 }
  0xe5   :  { %606 = vsyncpa [#allocation9], 1 }

</bundles_post_ra>
